<compile_context>
chip_gen: v6e
topology: v6e:2x2x1
jax: 0.10.0
libtpu: 0.0.40
codegen_flags: <defaults>
</compile_context>

<pallas_src>
import functools

import jax
import jax.numpy as jnp
from jax.experimental import pallas as pl
from jax.experimental.pallas import tpu as pltpu

BN_EPS = 1e-5      # nn.BatchNorm1d default eps
NORM_EPS = 1e-8    # manual_normalize eps


def _ncf_kernel(ue_ref, ie_ref,
                w1u_ref, w1i_ref, b1_ref,
                w2_ref, b2_ref,
                w3_ref, b3_ref,
                wp_ref, bp_ref,
                out_ref):
    # Upcast bf16 embedding rows to f32; all element-wise math stays f32.
    ue = ue_ref[...].astype(jnp.float32)   # (TB, D)
    ie = ie_ref[...].astype(jnp.float32)   # (TB, D)

    # manual_normalize: x / sqrt(clamp(sum(x^2, dim=1), min=eps)) == x * rsqrt(clamp(...))
    ue = ue * jax.lax.rsqrt(jnp.maximum(jnp.sum(ue * ue, axis=1, keepdims=True), NORM_EPS))
    ie = ie * jax.lax.rsqrt(jnp.maximum(jnp.sum(ie * ie, axis=1, keepdims=True), NORM_EPS))

    # feature_interaction: concat + Linear(2D, 64) expressed as two matmuls summed
    # (avoids the lane-dim concat / XLU traffic).  BN eval scale already folded in.
    x = (jnp.dot(ue, w1u_ref[...], preferred_element_type=jnp.float32)
         + jnp.dot(ie, w1i_ref[...], preferred_element_type=jnp.float32)
         + b1_ref[...])
    x = jnp.maximum(x, 0.0)                          # ReLU -> BN(folded) -> Dropout(eval)

    # mlp block 1: Linear(64, 32) -> ReLU -> BN(folded) -> Dropout(eval)
    x = jnp.dot(x, w2_ref[...], preferred_element_type=jnp.float32) + b2_ref[...]
    x = jnp.maximum(x, 0.0)

    # mlp block 2: Linear(32, 16) -> ReLU -> BN(folded) -> Dropout(eval)
    x = jnp.dot(x, w3_ref[...], preferred_element_type=jnp.float32) + b3_ref[...]
    x = jnp.maximum(x, 0.0)

    # prediction: Linear(16, 1) as VPU multiply + lane reduce (skip the N=1 MXU matmul)
    out_ref[...] = jnp.sum(x * wp_ref[...], axis=1, keepdims=True) + bp_ref[...]


def _round_up(x, m):
    return ((x + m - 1) // m) * m


@functools.partial(jax.jit, static_argnames=("tile_b",))
def ncf_forward(user_indices, item_indices, params, tile_b=512):
    """Runs the NCF forward pass; returns ratings of shape (B,)."""
    # Glue: embedding lookups (gather) in plain JAX; tables are bf16 so the
    # streamed (B, D) activations cost half the HBM bytes.
    # TODO(synk): for very large embedding tables, fuse the gather into the kernel
    # (scalar-prefetch index arrays + per-row manual async-copy gather).
    ue = jnp.take(params["user_embedding"], user_indices, axis=0)   # (B, D) bf16
    ie = jnp.take(params["item_embedding"], item_indices, axis=0)   # (B, D) bf16

    B, D = ue.shape
    # Tile over the batch: 512 rows by default (MXU M-friendly, multiple of 128
    # for v5e); clamp for small batches (multiple of 8 sublanes).
    tb = min(tile_b, _round_up(B, 8))
    b_pad = _round_up(B, tb)
    if b_pad != B:
        pad = ((0, b_pad - B), (0, 0))
        ue = jnp.pad(ue, pad)
        ie = jnp.pad(ie, pad)

    act_spec = pl.BlockSpec((tb, D), lambda i: (i, 0))

    def _resident_spec(arr):
        # Constant block index -> weight stays VMEM-resident across grid steps.
        return pl.BlockSpec(arr.shape, lambda i: (0, 0))

    weights = (
        params["w1_u"], params["w1_i"], params["b1"],
        params["w2"], params["b2"],
        params["w3"], params["b3"],
        params["wp"], params["bp"],
    )

    out = pl.pallas_call(
        _ncf_kernel,
        out_shape=jax.ShapeDtypeStruct((b_pad, 1), jnp.float32),
        grid=(b_pad // tb,),
        in_specs=[act_spec, act_spec] + [_resident_spec(w) for w in weights],
        out_specs=pl.BlockSpec((tb, 1), lambda i: (i, 0)),
        compiler_params=pltpu.CompilerParams(
            dimension_semantics=("parallel",)),
    )(ue, ie, *weights)

    # rating.squeeze() in PyTorch -> (B,); drop any batch padding.
    return out[:B, 0]


def ncf_reference(user_indices, item_indices, params):
    """Plain-JAX reference of the same (BN-folded, eval-mode) forward for validation."""
    ue = jnp.take(params["user_embedding"], user_indices, axis=0).astype(jnp.float32)
    ie = jnp.take(params["item_embedding"], item_indices, axis=0).astype(jnp.float32)
    ue = ue * jax.lax.rsqrt(jnp.maximum(jnp.sum(ue * ue, axis=1, keepdims=True), NORM_EPS))
    ie = ie * jax.lax.rsqrt(jnp.maximum(jnp.sum(ie * ie, axis=1, keepdims=True), NORM_EPS))
    x = ue @ params["w1_u"] + ie @ params["w1_i"] + params["b1"]
    x = jnp.maximum(x, 0.0)
    x = jnp.maximum(x @ params["w2"] + params["b2"], 0.0)
    x = jnp.maximum(x @ params["w3"] + params["b3"], 0.0)
    return (jnp.sum(x * params["wp"], axis=1, keepdims=True) + params["bp"])[:, 0]


def init_params(key, num_users, num_items, embedding_dim=32, mlp_layers=(64, 32, 16)):
    """Deterministic synthetic init matching the PyTorch module's shapes/init styles."""
    keys = jax.random.split(key, 6)

    def xavier_uniform(k, shape):
        fan_in, fan_out = shape
        bound = jnp.sqrt(6.0 / (fan_in + fan_out))
        return jax.random.uniform(k, shape, jnp.float32, -bound, bound)

    def kaiming_normal_fan_out(k, fan_in, fan_out):
        # kaiming_normal_(mode='fan_out', nonlinearity='relu'): std = sqrt(2 / fan_out)
        std = jnp.sqrt(2.0 / fan_out)
        # PyTorch Linear weight is (out, in); we store transposed (in, out).
        return std * jax.random.normal(k, (fan_in, fan_out), jnp.float32)

    d = embedding_dim
    l0, l1, l2 = mlp_layers
    return {
        "user_embedding": xavier_uniform(keys[0], (num_users, d)),
        "item_embedding": xavier_uniform(keys[1], (num_items, d)),
        "w1": kaiming_normal_fan_out(keys[2], 2 * d, l0),
        "b1": jnp.zeros((1, l0), jnp.float32),
        "w2": kaiming_normal_fan_out(keys[3], l0, l1),
        "b2": jnp.zeros((1, l1), jnp.float32),
        "w3": kaiming_normal_fan_out(keys[4], l1, l2),
        "b3": jnp.zeros((1, l2), jnp.float32),
        # prediction: normal(std=0.01), zero bias; stored transposed (l2, 1)
        "wp": 0.01 * jax.random.normal(keys[5], (l2, 1), jnp.float32),
        "bp": jnp.zeros((1, 1), jnp.float32),
    }


def prepare_params(params):
    """One-time offline prep for the kernel: fold eval-mode BN scale into W/b,
    split W1 for the concat-free first layer, bf16 embedding storage, wp as a row."""
    s = 1.0 / jnp.sqrt(1.0 + BN_EPS)   # BatchNorm1d eval with default running stats
    d = params["user_embedding"].shape[1]
    w1 = params["w1"] * s
    return {
        "user_embedding": params["user_embedding"].astype(jnp.bfloat16),
        "item_embedding": params["item_embedding"].astype(jnp.bfloat16),
        "w1_u": w1[:d, :],
        "w1_i": w1[d:, :],
        "b1": params["b1"] * s,
        "w2": params["w2"] * s,
        "b2": params["b2"] * s,
        "w3": params["w3"] * s,
        "b3": params["b3"] * s,
        "wp": params["wp"].T,          # (1, 16) row for the VPU multiply + lane reduce
        "bp": params["bp"],
    }


if __name__ == "__main__":
    key = jax.random.PRNGKey(0)
    k_params, k_users, k_items = jax.random.split(key, 3)

    num_users, num_items = 100, 200
    batch = 8

    params = prepare_params(
        init_params(k_params, num_users, num_items,
                    embedding_dim=32, mlp_layers=(64, 32, 16)))

    user_indices = jax.random.randint(k_users, (batch,), 0, num_users, dtype=jnp.int32)
    item_indices = jax.random.randint(k_items, (batch,), 0, num_items, dtype=jnp.int32)

    ratings = ncf_forward(user_indices, item_indices, params)
    jax.block_until_ready(ratings)

    assert ratings.shape == (batch,), ratings.shape
    assert ratings.dtype == jnp.float32
    assert bool(jnp.all(jnp.isfinite(ratings)))

    # Validate against a plain-JAX reference of the same folded forward.
    ref = ncf_reference(user_indices, item_indices, params)
    assert jnp.allclose(ratings, ref, atol=1e-4, rtol=1e-4), (ratings, ref)

    print("KERNEL_OK")
</pallas_src>

<mosaic_0001>
module attributes {stable_mosaic.version = 11 : i64} {
  func.func @_ncf_kernel(%arg0: i32, %arg1: memref<8x32xbf16, #tpu.memory_space<vmem>>, %arg2: memref<8x32xbf16, #tpu.memory_space<vmem>>, %arg3: memref<32x64xf32, #tpu.memory_space<vmem>>, %arg4: memref<32x64xf32, #tpu.memory_space<vmem>>, %arg5: memref<1x64xf32, #tpu.memory_space<vmem>>, %arg6: memref<64x32xf32, #tpu.memory_space<vmem>>, %arg7: memref<1x32xf32, #tpu.memory_space<vmem>>, %arg8: memref<32x16xf32, #tpu.memory_space<vmem>>, %arg9: memref<1x16xf32, #tpu.memory_space<vmem>>, %arg10: memref<1x16xf32, #tpu.memory_space<vmem>>, %arg11: memref<1x1xf32, #tpu.memory_space<vmem>>, %arg12: memref<8x1xf32, #tpu.memory_space<vmem>>) attributes {dimension_semantics = [#tpu.dimension_semantics<parallel>], iteration_bounds = array<i64: 1>, scalar_prefetch = 0 : i64, scratch_operands = 0 : i64, tpu.core_type = #tpu.core_type<tc>, window_params = [{transform_indices = @transform_0, window_bounds = array<i64: 8, 32>}, {transform_indices = @transform_1, window_bounds = array<i64: 8, 32>}, {pipeline_mode = #tpu.pipeline_mode<synchronous>, transform_indices = @transform_2, window_bounds = array<i64: 32, 64>}, {pipeline_mode = #tpu.pipeline_mode<synchronous>, transform_indices = @transform_3, window_bounds = array<i64: 32, 64>}, {pipeline_mode = #tpu.pipeline_mode<synchronous>, transform_indices = @transform_4, window_bounds = array<i64: 1, 64>}, {pipeline_mode = #tpu.pipeline_mode<synchronous>, transform_indices = @transform_5, window_bounds = array<i64: 64, 32>}, {pipeline_mode = #tpu.pipeline_mode<synchronous>, transform_indices = @transform_6, window_bounds = array<i64: 1, 32>}, {pipeline_mode = #tpu.pipeline_mode<synchronous>, transform_indices = @transform_7, window_bounds = array<i64: 32, 16>}, {pipeline_mode = #tpu.pipeline_mode<synchronous>, transform_indices = @transform_8, window_bounds = array<i64: 1, 16>}, {pipeline_mode = #tpu.pipeline_mode<synchronous>, transform_indices = @transform_9, window_bounds = array<i64: 1, 16>}, {pipeline_mode = #tpu.pipeline_mode<synchronous>, transform_indices = @transform_10, window_bounds = array<i64: 1, 1>}, {transform_indices = @transform_11, window_bounds = array<i64: 8, 1>}]} {
    %c0 = arith.constant 0 : index
    %c0_0 = arith.constant 0 : index
    %0 = vector.load %arg1[%c0, %c0_0] : memref<8x32xbf16, #tpu.memory_space<vmem>>, vector<8x32xbf16>
    %1 = arith.extf %0 : vector<8x32xbf16> to vector<8x32xf32>
    %c0_1 = arith.constant 0 : index
    %c0_2 = arith.constant 0 : index
    %2 = vector.load %arg2[%c0_1, %c0_2] : memref<8x32xbf16, #tpu.memory_space<vmem>>, vector<8x32xbf16>
    %3 = arith.extf %2 : vector<8x32xbf16> to vector<8x32xf32>
    %4 = arith.mulf %1, %1 : vector<8x32xf32>
    %cst = arith.constant dense<0.000000e+00> : vector<8xf32>
    %5 = vector.multi_reduction <add>, %4, %cst [1] : vector<8x32xf32> to vector<8xf32>
    %6 = vector.shape_cast %5 : vector<8xf32> to vector<8x1xf32>
    %cst_3 = arith.constant 9.99999993E-9 : f32
    %7 = vector.broadcast %cst_3 : f32 to vector<8x1xf32>
    %8 = arith.maximumf %6, %7 : vector<8x1xf32>
    %9 = math.rsqrt %8 : vector<8x1xf32>
    %10 = vector.broadcast %9 : vector<8x1xf32> to vector<8x32xf32>
    %11 = arith.mulf %1, %10 : vector<8x32xf32>
    %12 = arith.mulf %3, %3 : vector<8x32xf32>
    %cst_4 = arith.constant dense<0.000000e+00> : vector<8xf32>
    %13 = vector.multi_reduction <add>, %12, %cst_4 [1] : vector<8x32xf32> to vector<8xf32>
    %14 = vector.shape_cast %13 : vector<8xf32> to vector<8x1xf32>
    %cst_5 = arith.constant 9.99999993E-9 : f32
    %15 = vector.broadcast %cst_5 : f32 to vector<8x1xf32>
    %16 = arith.maximumf %14, %15 : vector<8x1xf32>
    %17 = math.rsqrt %16 : vector<8x1xf32>
    %18 = vector.broadcast %17 : vector<8x1xf32> to vector<8x32xf32>
    %19 = arith.mulf %3, %18 : vector<8x32xf32>
    %c0_6 = arith.constant 0 : index
    %c0_7 = arith.constant 0 : index
    %20 = vector.load %arg3[%c0_6, %c0_7] : memref<32x64xf32, #tpu.memory_space<vmem>>, vector<32x64xf32>
    %cst_8 = arith.constant dense<0.000000e+00> : vector<8x64xf32>
    %21 = tpu.matmul %11, %20, %cst_8 {dimension_numbers = #tpu.dot_dimension_numbers<[1], [0], [0], [1], [0, 0, 1, 1], [], []>} : vector<8x32xf32>, vector<32x64xf32>, vector<8x64xf32> -> vector<8x64xf32>
    %c0_9 = arith.constant 0 : index
    %c0_10 = arith.constant 0 : index
    %22 = vector.load %arg4[%c0_9, %c0_10] : memref<32x64xf32, #tpu.memory_space<vmem>>, vector<32x64xf32>
    %cst_11 = arith.constant dense<0.000000e+00> : vector<8x64xf32>
    %23 = tpu.matmul %19, %22, %cst_11 {dimension_numbers = #tpu.dot_dimension_numbers<[1], [0], [0], [1], [0, 0, 1, 1], [], []>} : vector<8x32xf32>, vector<32x64xf32>, vector<8x64xf32> -> vector<8x64xf32>
    %24 = arith.addf %21, %23 : vector<8x64xf32>
    %c0_12 = arith.constant 0 : index
    %c0_13 = arith.constant 0 : index
    %25 = vector.load %arg5[%c0_12, %c0_13] : memref<1x64xf32, #tpu.memory_space<vmem>>, vector<1x64xf32>
    %26 = vector.broadcast %25 : vector<1x64xf32> to vector<8x64xf32>
    %27 = arith.addf %24, %26 : vector<8x64xf32>
    %cst_14 = arith.constant 0.000000e+00 : f32
    %28 = vector.broadcast %cst_14 : f32 to vector<8x64xf32>
    %29 = arith.maximumf %27, %28 : vector<8x64xf32>
    %c0_15 = arith.constant 0 : index
    %c0_16 = arith.constant 0 : index
    %30 = vector.load %arg6[%c0_15, %c0_16] : memref<64x32xf32, #tpu.memory_space<vmem>>, vector<64x32xf32>
    %cst_17 = arith.constant dense<0.000000e+00> : vector<8x32xf32>
    %31 = tpu.matmul %29, %30, %cst_17 {dimension_numbers = #tpu.dot_dimension_numbers<[1], [0], [0], [1], [0, 0, 1, 1], [], []>} : vector<8x64xf32>, vector<64x32xf32>, vector<8x32xf32> -> vector<8x32xf32>
    %c0_18 = arith.constant 0 : index
    %c0_19 = arith.constant 0 : index
    %32 = vector.load %arg7[%c0_18, %c0_19] : memref<1x32xf32, #tpu.memory_space<vmem>>, vector<1x32xf32>
    %33 = vector.broadcast %32 : vector<1x32xf32> to vector<8x32xf32>
    %34 = arith.addf %31, %33 : vector<8x32xf32>
    %cst_20 = arith.constant 0.000000e+00 : f32
    %35 = vector.broadcast %cst_20 : f32 to vector<8x32xf32>
    %36 = arith.maximumf %34, %35 : vector<8x32xf32>
    %c0_21 = arith.constant 0 : index
    %c0_22 = arith.constant 0 : index
    %37 = vector.load %arg8[%c0_21, %c0_22] : memref<32x16xf32, #tpu.memory_space<vmem>>, vector<32x16xf32>
    %cst_23 = arith.constant dense<0.000000e+00> : vector<8x16xf32>
    %38 = tpu.matmul %36, %37, %cst_23 {dimension_numbers = #tpu.dot_dimension_numbers<[1], [0], [0], [1], [0, 0, 1, 1], [], []>} : vector<8x32xf32>, vector<32x16xf32>, vector<8x16xf32> -> vector<8x16xf32>
    %c0_24 = arith.constant 0 : index
    %c0_25 = arith.constant 0 : index
    %39 = vector.load %arg9[%c0_24, %c0_25] : memref<1x16xf32, #tpu.memory_space<vmem>>, vector<1x16xf32>
    %40 = vector.broadcast %39 : vector<1x16xf32> to vector<8x16xf32>
    %41 = arith.addf %38, %40 : vector<8x16xf32>
    %cst_26 = arith.constant 0.000000e+00 : f32
    %42 = vector.broadcast %cst_26 : f32 to vector<8x16xf32>
    %43 = arith.maximumf %41, %42 : vector<8x16xf32>
    %c0_27 = arith.constant 0 : index
    %c0_28 = arith.constant 0 : index
    %44 = vector.load %arg10[%c0_27, %c0_28] : memref<1x16xf32, #tpu.memory_space<vmem>>, vector<1x16xf32>
    %45 = vector.broadcast %44 : vector<1x16xf32> to vector<8x16xf32>
    %46 = arith.mulf %43, %45 : vector<8x16xf32>
    %cst_29 = arith.constant dense<0.000000e+00> : vector<8xf32>
    %47 = vector.multi_reduction <add>, %46, %cst_29 [1] : vector<8x16xf32> to vector<8xf32>
    %48 = vector.shape_cast %47 : vector<8xf32> to vector<8x1xf32>
    %c0_30 = arith.constant 0 : index
    %c0_31 = arith.constant 0 : index
    %49 = vector.load %arg11[%c0_30, %c0_31] : memref<1x1xf32, #tpu.memory_space<vmem>>, vector<1x1xf32>
    %50 = vector.broadcast %49 : vector<1x1xf32> to vector<8x1xf32>
    %51 = arith.addf %48, %50 : vector<8x1xf32>
    %c0_32 = arith.constant 0 : index
    %c0_33 = arith.constant 0 : index
    %52 = vector.load %arg12[%c0_32, %c0_33] : memref<8x1xf32, #tpu.memory_space<vmem>>, vector<8x1xf32>
    tpu.vector_store %arg12[%c0_32, %c0_33], %51 {strides = array<i32>} : memref<8x1xf32, #tpu.memory_space<vmem>>, vector<8x1xf32>,
    return
  }
  func.func @transform_0(%arg0: i32) -> (i32, i32) {
    %c0_i32 = arith.constant 0 : i32
    %c0_i32_0 = arith.constant 0 : i32
    return %arg0, %c0_i32 : i32, i32
  }
  func.func @transform_1(%arg0: i32) -> (i32, i32) {
    %c0_i32 = arith.constant 0 : i32
    %c0_i32_0 = arith.constant 0 : i32
    return %arg0, %c0_i32 : i32, i32
  }
  func.func @transform_2(%arg0: i32) -> (i32, i32) {
    %c0_i32 = arith.constant 0 : i32
    %c0_i32_0 = arith.constant 0 : i32
    %c0_i32_1 = arith.constant 0 : i32
    return %c0_i32, %c0_i32_0 : i32, i32
  }
  func.func @transform_3(%arg0: i32) -> (i32, i32) {
    %c0_i32 = arith.constant 0 : i32
    %c0_i32_0 = arith.constant 0 : i32
    %c0_i32_1 = arith.constant 0 : i32
    return %c0_i32, %c0_i32_0 : i32, i32
  }
  func.func @transform_4(%arg0: i32) -> (i32, i32) {
    %c0_i32 = arith.constant 0 : i32
    %c0_i32_0 = arith.constant 0 : i32
    %c0_i32_1 = arith.constant 0 : i32
    return %c0_i32, %c0_i32_0 : i32, i32
  }
  func.func @transform_5(%arg0: i32) -> (i32, i32) {
    %c0_i32 = arith.constant 0 : i32
    %c0_i32_0 = arith.constant 0 : i32
    %c0_i32_1 = arith.constant 0 : i32
    return %c0_i32, %c0_i32_0 : i32, i32
  }
  func.func @transform_6(%arg0: i32) -> (i32, i32) {
    %c0_i32 = arith.constant 0 : i32
    %c0_i32_0 = arith.constant 0 : i32
    %c0_i32_1 = arith.constant 0 : i32
    return %c0_i32, %c0_i32_0 : i32, i32
  }
  func.func @transform_7(%arg0: i32) -> (i32, i32) {
    %c0_i32 = arith.constant 0 : i32
    %c0_i32_0 = arith.constant 0 : i32
    %c0_i32_1 = arith.constant 0 : i32
    return %c0_i32, %c0_i32_0 : i32, i32
  }
  func.func @transform_8(%arg0: i32) -> (i32, i32) {
    %c0_i32 = arith.constant 0 : i32
    %c0_i32_0 = arith.constant 0 : i32
    %c0_i32_1 = arith.constant 0 : i32
    return %c0_i32, %c0_i32_0 : i32, i32
  }
  func.func @transform_9(%arg0: i32) -> (i32, i32) {
    %c0_i32 = arith.constant 0 : i32
    %c0_i32_0 = arith.constant 0 : i32
    %c0_i32_1 = arith.constant 0 : i32
    return %c0_i32, %c0_i32_0 : i32, i32
  }
  func.func @transform_10(%arg0: i32) -> (i32, i32) {
    %c0_i32 = arith.constant 0 : i32
    %c0_i32_0 = arith.constant 0 : i32
    %c0_i32_1 = arith.constant 0 : i32
    return %c0_i32, %c0_i32_0 : i32, i32
  }
  func.func @transform_11(%arg0: i32) -> (i32, i32) {
    %c0_i32 = arith.constant 0 : i32
    %c0_i32_0 = arith.constant 0 : i32
    return %arg0, %c0_i32 : i32, i32
  }
}

</mosaic_0001>

<bundles_post_ra>
// kernel: ncf_forward.1
= control target key start
LH: loop header
LB: loop body
LE: loop exit
PB: predicated region body
PF: predicated region fallthrough
CT: control target
= control target key end

     0   :  { %vm45_vm0 = vcmask 261120   ;;  %v514_v8 = vmov 0.0   ;;  %vm515_vm1 = vmmov 0   ;;  %vm237_vm2 = vcmask 523264   ;;  %s693_s0 = inlined_call_operand.vmem [shape: bf16[8,32], index: 0, kind: input, shape index: {}]   ;;  %s694_s1 = inlined_call_operand.vmem [shape: bf16[8,32], index: 1, kind: input, shape index: {}]   ;;  %s695_s2 = inlined_call_operand.vmem [shape: f32[32,64], index: 2, kind: input, shape index: {}]   ;;  %s696_s3 = inlined_call_operand.vmem [shape: f32[32,64], index: 3, kind: input, shape index: {}]   ;;  %s697_s5 = inlined_call_operand.vmem [shape: f32[64,32], index: 5, kind: input, shape index: {}]   ;;  %s698_s7 = inlined_call_operand.vmem [shape: f32[32,16], index: 7, kind: input, shape index: {}]   ;;  %s699_s4 = inlined_call_operand.vmem [shape: f32[1,64], index: 4, kind: input, shape index: {}]   ;;  %s700_s6 = inlined_call_operand.vmem [shape: f32[1,32], index: 6, kind: input, shape index: {}]   ;;  %s701_s10 = inlined_call_operand.<no memory space> [shape: f32[1,1], index: 10, kind: input, shape index: {}]   ;;  %s702_s8 = inlined_call_operand.vmem [shape: f32[1,16], index: 8, kind: input, shape index: {}]   ;;  %s703_s9 = inlined_call_operand.vmem [shape: f32[1,16], index: 9, kind: input, shape index: {}]   ;;  %s704_s11 = inlined_call_operand.vmem [shape: f32[8,1], index: 11, kind: output, shape index: {}]  }
   0x1   :  { %v40_v0 = vld [vmem:[%s693_s0] sm:$0xf]  ;;  %467 = vmatprep.subr.mxu1 %v514_v8  ;;  %v62_v9 = vld [vmem:[%s695_s2 + $0x18] sm:$0xff]  ;;  %v61_v10 = vld [vmem:[%s695_s2 + $0x10] sm:$0xff]  ;;  %456 = vmatprep.subr.mxu0 %v514_v8  ;;  %v16_v50 = vstv %s701_s10  ;;  %vm405_vm3 = vcmask 130048   ;;  %vm417_vm4 = vcmask 7168  }
   0x2   :  { %v42_v1 = vld [vmem:[%s694_s1] sm:$0xf]  ;;  %v41_v2 = vunpack.c.l.bf16 %v40_v0  ;;  %v66_v11 = vld [vmem:[%s696_s3 + $0x18] sm:$0xff]  ;;  %468 = vmatpush3.msra.mxu1 %v62_v9  ;;  %v65_v12 = vld [vmem:[%s696_s3 + $0x10] sm:$0xff]  ;;  %475 = vmatprep.mubr.msk.f32.mxu1 %vm515_vm1, %v514_v8  ;;  %17 = vst [vmem:[#allocation2] sm:$0x1] %v16_v50 }
   0x3   :  { %v43_v3 = vunpack.c.l.bf16 %v42_v1  ;;  %457 = vmatpush3.msra.mxu0 %v66_v11  ;;  %469 = vmatprep.subr.mxu1 %v514_v8  ;;  %v60_v13 = vld [vmem:[%s695_s2 + $0x8] sm:$0xff]  ;;  %v59_v14 = vld [vmem:[%s695_s2] sm:$0xff]  ;;  %v229_v25 = vld [vmem:[%s697_s5 + $0x38] sm:$0xff] }
   0x4   :  { %v44_v4 = vmul.f32 %v41_v2, %v41_v2  ;;  %458 = vmatprep.subr.mxu0 %v514_v8  ;;  %470 = vmatpush3.msra.mxu1 %v61_v10  ;;  %v64_v15 = vld [vmem:[%s696_s3 + $0x8] sm:$0xff]  ;;  %v63_v16 = vld [vmem:[%s696_s3] sm:$0xff]  ;;  %v228_v26 = vld [vmem:[%s697_s5 + $0x30] sm:$0xff] }
   0x5   :  { %v52_v5 = vmul.f32 %v43_v3, %v43_v3  ;;  %459 = vmatpush3.msra.mxu0 %v65_v12  ;;  %471 = vmatprep.subr.mxu1 %v514_v8  ;;  %v227_v27 = vld [vmem:[%s697_s5 + $0x28] sm:$0xff]  ;;  %v226_v28 = vld [vmem:[%s697_s5 + $0x20] sm:$0xff]  ;;  %v225_v29 = vld [vmem:[%s697_s5 + $0x18] sm:$0xff] }
   0x6   :  { %v46_v6 = vsel %vm45_vm0, %v44_v4, 0.0  ;;  %472 = vmatpush3.msra.mxu1 %v60_v13  ;;  %460 = vmatprep.subr.mxu0 %v514_v8  ;;  %v224_v30 = vld [vmem:[%s697_s5 + $0x10] sm:$0xff]  ;;  %v223_v31 = vld [vmem:[%s697_s5 + $0x8] sm:$0xff]  ;;  %v222_v32 = vld [vmem:[%s697_s5] sm:$0xff] }
   0x7   :  { %47 = vadd.xlane.f32.xlu0 %v46_v6  ;;  %v53_v7 = vsel %vm45_vm0, %v52_v5, 0.0  ;;  %473 = vmatprep.subr.mxu1 %v514_v8  ;;  %v315_v33 = vld [vmem:[%s698_s7 + $0x18] sm:$0xff]  ;;  %v425_v37 = vld [vmem:[%s699_s4] ss:$0 sm:$0xff]  ;;  %v314_v42 = vld [vmem:[%s698_s7 + $0x10] sm:$0xff] }
   0x8   :  { %464 = vmatprep.mubr.msk.f32.mxu0 %vm515_vm1, %v514_v8  ;;  %474 = vmatpush3.msra.mxu1 %v59_v14  ;;  %v313_v43 = vld [vmem:[%s698_s7 + $0x8] sm:$0xff]  ;;  %v312_v44 = vld [vmem:[%s698_s7] sm:$0xff] }
   0x9   :  { %497 = vmatprep.subr.mxu1 %v514_v8  ;;  %461 = vmatpush3.msra.mxu0 %v64_v15  ;;  %v426_v45 = vld [vmem:[%s700_s6] ss:$0 sm:$0xff] }
   0xa   :  { %462 = vmatprep.subr.mxu0 %v514_v8  ;;  %v428_v51 = vld [vmem:[%s702_s8] ss:$0 sm:$0xff] }
   0xb   :  { %54 = vadd.xlane.f32.xlu0 %v53_v7  ;;  %463 = vmatpush3.msra.mxu0 %v63_v16  ;;  %v430_v55 = vld [vmem:[%s703_s9] ss:$0 sm:$0xff] }
   0xc   :  { %478 = vmatprep.subr.mxu0 %v514_v8  ;;  %v431_v59 = vld [vmem:[#allocation2] ss:$0 sm:$0xff] }
  0x90   :  { %v48_v17 = vpop.xlane.xlu0 %47 }
  0x91   :  { %v49_v18 = vmax.f32 %v48_v17, 1e-08 }
  0x93   :  { %510 = vrsqrt.f32 %v49_v18 }
  0x94   :  { %v55_v19 = vpop.xlane.xlu0 %54 }
  0x95   :  { %v56_v20 = vmax.f32 %v55_v19, 1e-08 }
  0x97   :  { %512 = vrsqrt.f32 %v56_v20 }
  0xa0   :  { %v511_v21 = vpop.eup %510 }
  0xa1   :  { %v51_v22 = vmul.f32 %v511_v21, %v41_v2 }
  0xa3   :  { %476 = vmatmul.mubr.msk.f32.vlgmr.msra.gmra.mxu1 %vm45_vm0, %v51_v22 }
  0xa4   :  { %v513_v23 = vpop.eup %512  ;;  %505 = vmatprep.mubr.msk.f32.mxu1 %vm515_vm1, %v514_v8  ;;  %498 = vmatpush3.msra.mxu1 %v315_v33 }
  0xa5   :  { %v58_v24 = vmul.f32 %v513_v23, %v43_v3  ;;  %499 = vmatprep.subr.mxu1 %v514_v8 }
  0xa6   :  { %500 = vmatpush3.msra.mxu1 %v314_v42 }
  0xa7   :  { %465 = vmatmul.mubr.msk.f32.vlgmr.msra.gmra.mxu0 %vm45_vm0, %v58_v24  ;;  %501 = vmatprep.subr.mxu1 %v514_v8 }
  0xa8   :  { %479 = vmatpush3.msra.mxu0 %v229_v25  ;;  %494 = vmatprep.mubr.msk.f32.mxu0 %vm515_vm1, %v514_v8 }
  0xa9   :  { %480 = vmatprep.subr.mxu0 %v514_v8  ;;  %502 = vmatpush3.msra.mxu1 %v313_v43 }
  0xaa   :  { %481 = vmatpush3.msra.mxu0 %v228_v26  ;;  %503 = vmatprep.subr.mxu1 %v514_v8 }
  0xab   :  { %482 = vmatprep.subr.mxu0 %v514_v8  ;;  %504 = vmatpush3.msra.mxu1 %v312_v44 }
  0xac   :  { %483 = vmatpush3.msra.mxu0 %v227_v27 }
  0xad   :  { %484 = vmatprep.subr.mxu0 %v514_v8 }
  0xae   :  { %485 = vmatpush3.msra.mxu0 %v226_v28 }
  0xaf   :  { %486 = vmatprep.subr.mxu0 %v514_v8 }
  0xb0   :  { %487 = vmatpush3.msra.mxu0 %v225_v29 }
  0xb1   :  { %488 = vmatprep.subr.mxu0 %v514_v8 }
  0xb2   :  { %489 = vmatpush3.msra.mxu0 %v224_v30 }
  0xb3   :  { %490 = vmatprep.subr.mxu0 %v514_v8 }
  0xb4   :  { %491 = vmatpush3.msra.mxu0 %v223_v31 }
  0xb5   :  { %492 = vmatprep.subr.mxu0 %v514_v8 }
  0xb6   :  { %493 = vmatpush3.msra.mxu0 %v222_v32 }
 0x163   :  { %v209_v34 = vpop.f32.mrf.mxu1 }
 0x165   :  { %v477_v35 = vpop.f32.mrf.mxu1 }
 0x167   :  { %v136_v36 = vpop.f32.mrf.mxu0 }
 0x168   :  { %v210_v38 = vadd.f32 %v209_v34, %v136_v36 }
 0x169   :  { %v466_v39 = vpop.f32.mrf.mxu0 }
 0x16a   :  { %v220_v40 = vadd.f32 %v425_v37, %v210_v38 }
 0x16c   :  { %v221_v41 = vmax.f32 %v220_v40, 0.0 }
 0x16e   :  { %495 = vmatmul.mubr.msk.f32.vlgmr.msra.gmra.mxu0 %vm237_vm2, %v221_v41 }
 0x22e   :  { %v307_v46 = vpop.f32.mrf.mxu0 }
 0x22f   :  { %v308_v47 = vadd.f32 %v426_v45, %v307_v46 }
 0x230   :  { %v496_v48 = vpop.f32.mrf.mxu0 }
 0x231   :  { %v311_v49 = vmax.f32 %v308_v47, 0.0 }
 0x233   :  { %506 = vmatmul.mubr.msk.f32.vlgmr.msra.gmra.mxu1 %vm45_vm0, %v311_v49 }
 0x2f3   :  { %v392_v52 = vpop.f32.mrf.mxu1 }
 0x2f4   :  { %v393_v53 = vadd.f32 %v428_v51, %v392_v52 }
 0x2f5   :  { %v507_v54 = vpop.f32.mrf.mxu1 }
 0x2f6   :  { %v396_v56 = vmax.f32 %v393_v53, 0.0 }
 0x2f8   :  { %v404_v57 = vmul.f32 %v430_v55, %v396_v56 }
 0x2fa   :  { %v406_v58 = vsel %vm405_vm3, %v404_v57, 0.0 }
 0x2fb   :  { %407 = vadd.xlane.f32.xlu1 %v406_v58 }
 0x384   :  { %v408_v60 = vpop.xlane.xlu1 %407 }
 0x385   :  { %v416_v61 = vadd.f32 %v431_v59, %v408_v60 }
 0x387   :  { %418 = vst.msk [vmem:[%s704_s11] sm:$0xff] %vm417_vm4, %v416_v61 }

</bundles_post_ra>
